<compile_context>
chip_gen: v5e
topology: v5e:2x2
jax: 0.10.0
libtpu: 0.0.40
codegen_flags: <defaults>
</compile_context>

<pallas_src>
import functools
import math

import jax
import jax.numpy as jnp
from jax.experimental import pallas as pl
from jax.experimental.pallas import tpu as pltpu


def _round_up(x: int, m: int) -> int:
    return (x + m - 1) // m * m


def _cdiv(a: int, b: int) -> int:
    return -(-a // b)


def _vmem_padded_bytes(shape, itemsize: int) -> int:
    """Bytes a buffer occupies in VMEM after (8,128) tile padding."""
    if len(shape) == 1:
        r, c = 1, shape[0]
        lead = 1
    else:
        r, c = shape[-2], shape[-1]
        lead = math.prod(shape[:-2]) if len(shape) > 2 else 1
    return lead * _round_up(max(r, 1), 8) * _round_up(max(c, 1), 128) * itemsize


# ------------------------------ Pallas kernel ------------------------------ #

def _mlp_kernel(x_ref, *refs, num_layers):
    """refs = (w0, b0, w1, b1, ..., w_{L-1}, b_{L-1}, out).

    x_ref : (tm, K)       bf16 row tile
    w_i   : (K_i, N_i)    bf16, fully resident, single-buffered
    b_i   : (1,   N_i)    f32,  fully resident, single-buffered
    out   : (tm, N_last)  f32
    """
    o_ref = refs[-1]
    h = x_ref[...]                                   # bf16 activations
    for i in range(num_layers):                      # static unroll
        w = refs[2 * i][...]                         # bf16
        b = refs[2 * i + 1][...]                     # f32 (1, N_i)
        y = jnp.dot(h, w, preferred_element_type=jnp.float32)   # MXU, f32 acc
        y = y + b                                    # f32 epilogue
        if i < num_layers - 1:
            h = jnp.maximum(y, 0.0).astype(jnp.bfloat16)  # ReLU, bf16 carry
        else:
            h = y
    o_ref[...] = h.astype(o_ref.dtype)


# ------------------------------ host wrappers ------------------------------ #

def prepare_mlp_params(weights, biases):
    """Pre-cast weights to bf16 and reshape biases to (1, N) f32. No padding."""
    params = []
    for w, b in zip(weights, biases):
        params.append((jnp.asarray(w, jnp.bfloat16),
                       jnp.asarray(b, jnp.float32).reshape(1, -1)))
    return params


def mlp_forward(x, params, *, block_m=512):
    """x: (..., K) -> (..., out_dim). Runs the whole MLP in one Pallas kernel."""
    orig_shape = x.shape
    K = orig_shape[-1]
    M = math.prod(orig_shape[:-1]) if len(orig_shape) > 1 else 1
    M = max(M, 1)
    num_layers = len(params)
    out_dim = params[-1][0].shape[1]

    # Row tiling: tm multiple of 8 (sublane), capped by block_m; keep >= 2 grid
    # steps when M allows it so v7x megacore can shard the "parallel" axis.
    tm = min(block_m, _round_up(M, 8))
    if M > 8 and _cdiv(M, tm) < 2:
        tm = _round_up(_cdiv(M, 2), 8)
    m_pad = _round_up(M, tm)

    x2 = x.reshape(M, K).astype(jnp.bfloat16)
    if m_pad != M:                                   # pad rows only when needed
        x2 = jnp.pad(x2, ((0, m_pad - M), (0, 0)))

    in_specs = [pl.BlockSpec((tm, K), lambda i: (i, 0))]
    args = [x2]
    for w_p, b_p in params:
        # Constant block index across the grid -> resident; single-buffer to
        # halve their VMEM footprint (headroom for v7x's 64 MiB VMEM).
        in_specs.append(pl.BlockSpec(w_p.shape, lambda i: (0, 0),
                                     pipeline_mode=pl.Buffered(1)))
        in_specs.append(pl.BlockSpec(b_p.shape, lambda i: (0, 0),
                                     pipeline_mode=pl.Buffered(1)))
        args.extend([w_p, b_p])

    # Computed VMEM budget (double-buffered I/O tiles + single-buffered params),
    # generous headroom, capped well under v7x's 64 MiB physical VMEM.
    footprint = 2 * _vmem_padded_bytes((tm, K), 2)            # bf16 input tile
    footprint += 2 * _vmem_padded_bytes((tm, out_dim), 4)     # f32 output tile
    for w_p, b_p in params:
        footprint += _vmem_padded_bytes(w_p.shape, 2)
        footprint += _vmem_padded_bytes(b_p.shape, 4)
    vmem_limit = min(32 * 1024 * 1024,
                     max(16 * 1024 * 1024, 2 * footprint + (4 << 20)))

    out = pl.pallas_call(
        functools.partial(_mlp_kernel, num_layers=num_layers),
        out_shape=jax.ShapeDtypeStruct((m_pad, out_dim), jnp.float32),
        grid=(m_pad // tm,),
        in_specs=in_specs,
        out_specs=pl.BlockSpec((tm, out_dim), lambda i: (i, 0)),
        compiler_params=pltpu.CompilerParams(
            dimension_semantics=("parallel",),
            vmem_limit_bytes=vmem_limit,
        ),
    )(*args)

    if m_pad != M:
        out = out[:M]
    return out.reshape(orig_shape[:-1] + (out_dim,))


def mlp_reference(x, weights, biases):
    h = x
    for i, (w, b) in enumerate(zip(weights, biases)):
        h = h @ w + b
        if i < len(weights) - 1:
            h = jnp.maximum(h, 0.0)
    return h


# ---------------------------------- main ----------------------------------- #

if __name__ == "__main__":
    # MLP(input_dim=32, hidden_dim=32, output_dim=4, num_layers=3), as used for
    # bbox regression in EEVG; x has arbitrary leading dims with last dim = 32.
    IN_DIM, HID, OUT_DIM, NUM_LAYERS = 32, 32, 4, 3
    B, S = 2, 8

    dims = [IN_DIM] + [HID] * (NUM_LAYERS - 1) + [OUT_DIM]
    root = jax.random.PRNGKey(0)
    keys = jax.random.split(root, 2 * NUM_LAYERS + 1)

    weights, biases = [], []
    for i in range(NUM_LAYERS):
        w = jax.random.normal(keys[2 * i], (dims[i], dims[i + 1]), jnp.float32) * 0.02
        b = jax.random.normal(keys[2 * i + 1], (dims[i + 1],), jnp.float32) * 0.02
        weights.append(w)
        biases.append(b)

    x = jax.random.normal(keys[-1], (B, S, IN_DIM), jnp.float32)

    params = prepare_mlp_params(weights, biases)

    # Default block_m=512: at these toy sizes the >=2-grid-step rule kicks in and
    # tm drops to 8 (exercising a multi-step pipelined grid); at production sizes
    # tm stays 512 for near-roofline HBM tiles.
    fwd = jax.jit(functools.partial(mlp_forward))
    out = fwd(x, params)
    out = jax.block_until_ready(out)

    ref = mlp_reference(x, weights, biases)

    assert out.shape == (B, S, OUT_DIM), out.shape
    assert bool(jnp.all(jnp.isfinite(out)))
    assert bool(jnp.allclose(out, ref, atol=1e-2, rtol=1e-2)), float(
        jnp.max(jnp.abs(out - ref)))
    print("KERNEL_OK")
</pallas_src>

<mosaic_0001>
module attributes {stable_mosaic.version = 11 : i64} {
  func.func @_mlp_kernel(%arg0: i32, %arg1: memref<8x32xbf16, #tpu.memory_space<vmem>>, %arg2: memref<32x32xbf16, #tpu.memory_space<vmem>>, %arg3: memref<1x32xf32, #tpu.memory_space<vmem>>, %arg4: memref<32x32xbf16, #tpu.memory_space<vmem>>, %arg5: memref<1x32xf32, #tpu.memory_space<vmem>>, %arg6: memref<32x4xbf16, #tpu.memory_space<vmem>>, %arg7: memref<1x4xf32, #tpu.memory_space<vmem>>, %arg8: memref<8x4xf32, #tpu.memory_space<vmem>>) attributes {dimension_semantics = [#tpu.dimension_semantics<parallel>], iteration_bounds = array<i64: 2>, scalar_prefetch = 0 : i64, scratch_operands = 0 : i64, tpu.core_type = #tpu.core_type<tc>, window_params = [{transform_indices = @transform_0, window_bounds = array<i64: 8, 32>}, {pipeline_mode = #tpu.pipeline_mode<synchronous>, transform_indices = @transform_1, window_bounds = array<i64: 32, 32>}, {pipeline_mode = #tpu.pipeline_mode<synchronous>, transform_indices = @transform_2, window_bounds = array<i64: 1, 32>}, {pipeline_mode = #tpu.pipeline_mode<synchronous>, transform_indices = @transform_3, window_bounds = array<i64: 32, 32>}, {pipeline_mode = #tpu.pipeline_mode<synchronous>, transform_indices = @transform_4, window_bounds = array<i64: 1, 32>}, {pipeline_mode = #tpu.pipeline_mode<synchronous>, transform_indices = @transform_5, window_bounds = array<i64: 32, 4>}, {pipeline_mode = #tpu.pipeline_mode<synchronous>, transform_indices = @transform_6, window_bounds = array<i64: 1, 4>}, {transform_indices = @transform_7, window_bounds = array<i64: 8, 4>}]} {
    %c0 = arith.constant 0 : index
    %c0_0 = arith.constant 0 : index
    %0 = vector.load %arg1[%c0, %c0_0] : memref<8x32xbf16, #tpu.memory_space<vmem>>, vector<8x32xbf16>
    %c0_1 = arith.constant 0 : index
    %c0_2 = arith.constant 0 : index
    %1 = vector.load %arg2[%c0_1, %c0_2] : memref<32x32xbf16, #tpu.memory_space<vmem>>, vector<32x32xbf16>
    %c0_3 = arith.constant 0 : index
    %c0_4 = arith.constant 0 : index
    %2 = vector.load %arg3[%c0_3, %c0_4] : memref<1x32xf32, #tpu.memory_space<vmem>>, vector<1x32xf32>
    %cst = arith.constant dense<0.000000e+00> : vector<8x32xf32>
    %3 = tpu.matmul %0, %1, %cst {dimension_numbers = #tpu.dot_dimension_numbers<[1], [0], [0], [1], [0, 0, 1, 1], [], []>} : vector<8x32xbf16>, vector<32x32xbf16>, vector<8x32xf32> -> vector<8x32xf32>
    %4 = vector.broadcast %2 : vector<1x32xf32> to vector<8x32xf32>
    %5 = arith.addf %3, %4 : vector<8x32xf32>
    %cst_5 = arith.constant 0.000000e+00 : f32
    %6 = vector.broadcast %cst_5 : f32 to vector<8x32xf32>
    %7 = arith.maximumf %5, %6 : vector<8x32xf32>
    %8 = arith.truncf %7 : vector<8x32xf32> to vector<8x32xbf16>
    %c0_6 = arith.constant 0 : index
    %c0_7 = arith.constant 0 : index
    %9 = vector.load %arg4[%c0_6, %c0_7] : memref<32x32xbf16, #tpu.memory_space<vmem>>, vector<32x32xbf16>
    %c0_8 = arith.constant 0 : index
    %c0_9 = arith.constant 0 : index
    %10 = vector.load %arg5[%c0_8, %c0_9] : memref<1x32xf32, #tpu.memory_space<vmem>>, vector<1x32xf32>
    %cst_10 = arith.constant dense<0.000000e+00> : vector<8x32xf32>
    %11 = tpu.matmul %8, %9, %cst_10 {dimension_numbers = #tpu.dot_dimension_numbers<[1], [0], [0], [1], [0, 0, 1, 1], [], []>} : vector<8x32xbf16>, vector<32x32xbf16>, vector<8x32xf32> -> vector<8x32xf32>
    %12 = vector.broadcast %10 : vector<1x32xf32> to vector<8x32xf32>
    %13 = arith.addf %11, %12 : vector<8x32xf32>
    %cst_11 = arith.constant 0.000000e+00 : f32
    %14 = vector.broadcast %cst_11 : f32 to vector<8x32xf32>
    %15 = arith.maximumf %13, %14 : vector<8x32xf32>
    %16 = arith.truncf %15 : vector<8x32xf32> to vector<8x32xbf16>
    %c0_12 = arith.constant 0 : index
    %c0_13 = arith.constant 0 : index
    %17 = vector.load %arg6[%c0_12, %c0_13] : memref<32x4xbf16, #tpu.memory_space<vmem>>, vector<32x4xbf16>
    %c0_14 = arith.constant 0 : index
    %c0_15 = arith.constant 0 : index
    %18 = vector.load %arg7[%c0_14, %c0_15] : memref<1x4xf32, #tpu.memory_space<vmem>>, vector<1x4xf32>
    %cst_16 = arith.constant dense<0.000000e+00> : vector<8x4xf32>
    %19 = tpu.matmul %16, %17, %cst_16 {dimension_numbers = #tpu.dot_dimension_numbers<[1], [0], [0], [1], [0, 0, 1, 1], [], []>} : vector<8x32xbf16>, vector<32x4xbf16>, vector<8x4xf32> -> vector<8x4xf32>
    %20 = vector.broadcast %18 : vector<1x4xf32> to vector<8x4xf32>
    %21 = arith.addf %19, %20 : vector<8x4xf32>
    %c0_17 = arith.constant 0 : index
    %c0_18 = arith.constant 0 : index
    %22 = vector.load %arg8[%c0_17, %c0_18] : memref<8x4xf32, #tpu.memory_space<vmem>>, vector<8x4xf32>
    tpu.vector_store %arg8[%c0_17, %c0_18], %21 {strides = array<i32>} : memref<8x4xf32, #tpu.memory_space<vmem>>, vector<8x4xf32>,
    return
  }
  func.func @transform_0(%arg0: i32) -> (i32, i32) {
    %c0_i32 = arith.constant 0 : i32
    %c0_i32_0 = arith.constant 0 : i32
    return %arg0, %c0_i32 : i32, i32
  }
  func.func @transform_1(%arg0: i32) -> (i32, i32) {
    %c0_i32 = arith.constant 0 : i32
    %c0_i32_0 = arith.constant 0 : i32
    %c0_i32_1 = arith.constant 0 : i32
    return %c0_i32, %c0_i32_0 : i32, i32
  }
  func.func @transform_2(%arg0: i32) -> (i32, i32) {
    %c0_i32 = arith.constant 0 : i32
    %c0_i32_0 = arith.constant 0 : i32
    %c0_i32_1 = arith.constant 0 : i32
    return %c0_i32, %c0_i32_0 : i32, i32
  }
  func.func @transform_3(%arg0: i32) -> (i32, i32) {
    %c0_i32 = arith.constant 0 : i32
    %c0_i32_0 = arith.constant 0 : i32
    %c0_i32_1 = arith.constant 0 : i32
    return %c0_i32, %c0_i32_0 : i32, i32
  }
  func.func @transform_4(%arg0: i32) -> (i32, i32) {
    %c0_i32 = arith.constant 0 : i32
    %c0_i32_0 = arith.constant 0 : i32
    %c0_i32_1 = arith.constant 0 : i32
    return %c0_i32, %c0_i32_0 : i32, i32
  }
  func.func @transform_5(%arg0: i32) -> (i32, i32) {
    %c0_i32 = arith.constant 0 : i32
    %c0_i32_0 = arith.constant 0 : i32
    %c0_i32_1 = arith.constant 0 : i32
    return %c0_i32, %c0_i32_0 : i32, i32
  }
  func.func @transform_6(%arg0: i32) -> (i32, i32) {
    %c0_i32 = arith.constant 0 : i32
    %c0_i32_0 = arith.constant 0 : i32
    %c0_i32_1 = arith.constant 0 : i32
    return %c0_i32, %c0_i32_0 : i32, i32
  }
  func.func @transform_7(%arg0: i32) -> (i32, i32) {
    %c0_i32 = arith.constant 0 : i32
    %c0_i32_0 = arith.constant 0 : i32
    return %arg0, %c0_i32 : i32, i32
  }
}

</mosaic_0001>

<bundles_post_ra>
// kernel: mlp_forward.1
= control target key start
LH: loop header
LB: loop body
LE: loop exit
PB: predicated region body
PF: predicated region fallthrough
CT: control target
= control target key end

     0   :  { %s545_s24 = smov 0   ;;  %s596_s0 = inlined_call_operand.vmem [shape: bf16[16,32], index: 0, kind: input, shape index: {}]   ;;  %s597_s1 = inlined_call_operand.vmem [shape: bf16[32,32], index: 1, kind: input, shape index: {}]   ;;  %s598_s2 = inlined_call_operand.vmem [shape: f32[1,32], index: 2, kind: input, shape index: {}]   ;;  %s599_s3 = inlined_call_operand.vmem [shape: bf16[32,32], index: 3, kind: input, shape index: {}]   ;;  %s600_s4 = inlined_call_operand.vmem [shape: f32[1,32], index: 4, kind: input, shape index: {}]   ;;  %s601_s5 = inlined_call_operand.vmem [shape: bf16[32,4], index: 5, kind: input, shape index: {}]   ;;  %s602_s6 = inlined_call_operand.vmem [shape: f32[1,4], index: 6, kind: input, shape index: {}]   ;;  %s603_s7 = inlined_call_operand.vmem [shape: f32[16,4], index: 7, kind: output, shape index: {}]  }
   0x1 LB: > { %s444_s25 = sadd.s32 4294967295, %s503_s24   ;;  %p448_p0 = scmp.ge.s32.totalorder %s503_s24, 1  ;;  %s503_s24 = sphi %s545_s24, %s17_s24  }
   0x2   : > { %p236_p1 = scmp.lt.s32.totalorder %s503_s24, 3 }
   0x4   : > { %p237_p2 = pnand %p448_p0, %p236_p1 }
   0x5   : > { %p266_p3 = scmp.lt.s32.totalorder (!%p237_p2), %s444_s25, 1 }
   0x6   : > { %240 = sbr.rel (%p237_p2) target bundleno = 423 (0x1a7), region = 48 }
   0xb   : > { %v481_v0 = vld [vmem:[%s597_s1 + $0x8] sm:$0xff]  ;;  %v480_v1 = vld [vmem:[%s597_s1] sm:$0xff]  ;;  %s605_s25 = smov (!%p266_p3, %s444_s25), 1  ;;  %vm296_vm0 = vcmask 261120   ;;  %vm389_vm1 = vcmask 31744  }
   0xc   : > { %306 = vmatpush.bf16.msra.mxu0 %v481_v0  ;;  %s449_s30 = sshll.u32 %s605_s25, 2  ;;  %v483_v3 = vld [vmem:[%s599_s3 + $0x8] sm:$0xff]  ;;  %v482_v4 = vld [vmem:[%s599_s3] sm:$0xff]  ;;  %s450_s23 = sshll.u32 %s605_s25, 3 }
   0xd   : > { %s269_s10 = scalar_lea.vmem %s596_s0, %s449_s30  ;;  %344 = vmatpush.bf16.msra.mxu1 %v483_v3  ;;  %v494_v5 = vld [vmem:[%s598_s2] ss:$0 sm:$0xff]  ;;  %v485_v11 = vld [vmem:[%s601_s5 + $0x8] sm:$0xff]  ;;  %s273_s30 = scalar_lea.vmem %s603_s7, %s450_s23 }
   0xe   : > { %v275_v2 = vld [vmem:[%s269_s10] sm:$0xf]  ;;  %382 = vmatpush.bf16.msra.mxu2 %v485_v11 }
   0xf   : > { %v484_v12 = vld [vmem:[%s601_s5] sm:$0xff] }
  0x10   : > { %307 = vmatpush.bf16.msra.mxu0 %v480_v1  ;;  %v495_v13 = vld [vmem:[%s600_s4] ss:$0 sm:$0xff] }
  0x11   : > { %345 = vmatpush.bf16.msra.mxu1 %v482_v4  ;;  %v496_v19 = vld [vmem:[%s602_s6] ss:$0 sm:$0xff] }
  0x12   : > { %383 = vmatpush.bf16.msra.mxu2 %v484_v12 }
  0x13   : > { %459 = vmatmul.msk.bf16.vlgmr.msra.gmra.mxu0 %vm296_vm0, %v275_v2 }
  0x90   : > { %v309_v6 = vpop.f32.mrf.mxu0 }
  0x91   : > { %v310_v7 = vadd.f32 %v494_v5, %v309_v6 }
  0x93   : > { %v313_v8 = vmax.f32 %v310_v7, 0.0 }
  0x95   : > { %v314_v9 = vpack.c.bf16 %v313_v8, %v313_v8 }
  0x97   : > { %468 = vmatmul.msk.bf16.vlgmr.msra.gmra.mxu1 %vm296_vm0, %v314_v9 }
  0x98   : > { %v311_v10 = vpop.f32.mrf.mxu0 }
 0x114   : > { %v347_v14 = vpop.f32.mrf.mxu1 }
 0x115   : > { %v348_v15 = vadd.f32 %v495_v13, %v347_v14 }
 0x117   : > { %v351_v16 = vmax.f32 %v348_v15, 0.0 }
 0x119   : > { %v352_v17 = vpack.c.bf16 %v351_v16, %v351_v16 }
 0x11b   : > { %477 = vmatmul.msk.bf16.vlgmr.msra.gmra.mxu2 %vm296_vm0, %v352_v17 }
 0x11c   : > { %v349_v18 = vpop.f32.mrf.mxu1 }
 0x19e   : > { %v385_v20 = vpop.f32.mrf.mxu2 }
 0x19f   : > { %v386_v21 = vadd.f32 %v496_v19, %v385_v20 }
 0x1a1   : > { %390 = vst.msk [vmem:[%s273_s30] sm:$0xff] %vm389_vm1, %v386_v21 }
 0x1a6   : > { %v387_v22 = vpop.f32.mrf.mxu2 }
 0x1a7 PF: > { %s17_s24 = sadd.s32 1, %s503_s24  }
 0x1a8   : > { %p14_p4 = scmp.ge.s32.totalorder %s17_s24, 4  }
 0x1aa   :  { %16 = sbr.rel (!%p14_p4) target bundleno = 1 (0x1), region = 78 }

</bundles_post_ra>
